<compile_context>
chip_gen: v7x
topology: tpu7x:2x2x1
jax: 0.10.0
libtpu: 0.0.40
codegen_flags: <defaults>
</compile_context>

<pallas_src>
import jax
import jax.numpy as jnp
from jax.experimental import pallas as pl
from jax.experimental.pallas import tpu as pltpu

HIDDEN = 200        # fc1 output features (PyTorch spec)
HIDDEN_PAD = 256    # 2 lane-dense vregs; MXU N of matmul-1 and K of matmul-2


def _round_up(n, m):
    return ((n + m - 1) // m) * m


def _embedding_net_kernel(x_ref, w1_ref, b1_ref, w2_ref, b2_ref, o_ref):
    # x_ref : [TB, H]      f32 batch tile (double-buffered by BlockSpec)
    # w1_ref: [H, 256]     bf16 fc1.weight.T, zero-padded 200->256 (resident)
    # b1_ref: [1, 256]     f32  fc1.bias,     zero-padded          (resident)
    # w2_ref: [256, OUT]   bf16 fc2.weight.T, zero-padded rows     (resident)
    # b2_ref: [1, OUT]     f32  fc2.bias                           (resident)
    # o_ref : [TB, OUT]    f32 output tile (exact width; masked vst)
    x = x_ref[...].astype(jnp.bfloat16)                     # bf16 MXU operand
    h = jnp.dot(x, w1_ref[...], preferred_element_type=jnp.float32)
    h = jnp.tanh(h + b1_ref[...])                           # f32 add + EUP tanh
    out = jnp.dot(h.astype(jnp.bfloat16), w2_ref[...],
                  preferred_element_type=jnp.float32)
    o_ref[...] = (out + b2_ref[...]).astype(o_ref.dtype)


def embedding_net_forward(x, w1, b1, w2, b2, *, block_b=4096):
    """Eval-mode EmbeddingNet forward.

    x: [B, H]; w1: [200, H]; b1: [200]; w2: [OUT, 200]; b2: [OUT].
    """
    B, H = x.shape
    OUT = w2.shape[0]
    H1 = w1.shape[0]                     # 200
    out_dt = x.dtype

    # --- wrapper-side layout plumbing (exact; zero padding contributes 0) ---
    w1t = jnp.zeros((H, HIDDEN_PAD), jnp.bfloat16).at[:, :H1].set(
        w1.T.astype(jnp.bfloat16))
    b1p = jnp.zeros((1, HIDDEN_PAD), jnp.float32).at[:, :H1].set(
        b1.astype(jnp.float32))
    w2t = jnp.zeros((HIDDEN_PAD, OUT), jnp.bfloat16).at[:H1, :].set(
        w2.T.astype(jnp.bfloat16))
    b2p = b2.astype(jnp.float32).reshape(1, OUT)

    # --- batch-tile sizing from a VMEM budget (v5e/v6e 128 MiB, v7x 64) ---
    try:
        vmem_cap = int(pltpu.get_tpu_info().vmem_capacity_bytes)
    except Exception:
        vmem_cap = 64 << 20              # conservative: v7x per-core VMEM
    vmem_limit = int(vmem_cap * 0.75)    # headroom for compiler scratch

    resident = 2 * (w1t.size * w1t.dtype.itemsize + b1p.size * b1p.dtype.itemsize
                    + w2t.size * w2t.dtype.itemsize + b2p.size * b2p.dtype.itemsize)
    per_row = 2 * (H + OUT) * x.dtype.itemsize   # double-buffered x + out tiles
    tile_budget = max(vmem_limit - resident - (4 << 20), 8 * per_row)
    tb_budget = max(8, (tile_budget // per_row) // 8 * 8)

    tb = min(_round_up(B, 8), _round_up(block_b, 8), tb_budget)
    if B > 8:
        # >= 2 grid steps so the "parallel" batch axis feeds both v7x cores.
        tb = min(tb, _round_up(pl.cdiv(B, 2), 8))
    tb = max(tb, 8)

    def run(single_buffer_weights):
        def const_spec(shape):
            imap = lambda i: (0, 0)
            if single_buffer_weights:
                # Constant index_map => fetched once; no need for 2 buffers.
                return pl.BlockSpec(shape, imap, pipeline_mode=pl.Buffered(1))
            return pl.BlockSpec(shape, imap)

        return pl.pallas_call(
            _embedding_net_kernel,
            out_shape=jax.ShapeDtypeStruct((B, OUT), out_dt),
            grid=(pl.cdiv(B, tb),),          # ragged last block handled by Pallas
            in_specs=[
                pl.BlockSpec((tb, H), lambda i: (i, 0)),   # x tile (pipelined)
                const_spec((H, HIDDEN_PAD)),               # W1^T (resident)
                const_spec((1, HIDDEN_PAD)),               # b1   (resident)
                const_spec((HIDDEN_PAD, OUT)),             # W2^T (resident)
                const_spec((1, OUT)),                      # b2   (resident)
            ],
            out_specs=pl.BlockSpec((tb, OUT), lambda i: (i, 0)),
            compiler_params=pltpu.CompilerParams(
                dimension_semantics=("parallel",),         # megacore sharding
                vmem_limit_bytes=vmem_limit,
            ),
        )(x, w1t, b1p, w2t, b2p)

    try:
        return run(True)
    except Exception:
        # Fallback for jax versions without pipeline_mode / Buffered(1).
        return run(False)


def init_params(key, hidden_size, output_size):
    """Deterministic synthetic params matching nn.Linear shapes."""
    k1, k2, k3, k4 = jax.random.split(key, 4)
    lim1 = 1.0 / jnp.sqrt(hidden_size)
    lim2 = 1.0 / jnp.sqrt(float(HIDDEN))
    w1 = jax.random.uniform(k1, (HIDDEN, hidden_size), jnp.float32, -lim1, lim1)
    b1 = jax.random.uniform(k2, (HIDDEN,), jnp.float32, -lim1, lim1)
    w2 = jax.random.uniform(k3, (output_size, HIDDEN), jnp.float32, -lim2, lim2)
    b2 = jax.random.uniform(k4, (output_size,), jnp.float32, -lim2, lim2)
    return w1, b1, w2, b2


if __name__ == "__main__":
    hidden_size = 32
    output_size = 16
    batch = 8

    key = jax.random.PRNGKey(0)
    kx, kp = jax.random.split(key)
    x = jax.random.normal(kx, (batch, hidden_size), jnp.float32)
    w1, b1, w2, b2 = init_params(kp, hidden_size, output_size)

    out = jax.block_until_ready(embedding_net_forward(x, w1, b1, w2, b2))

    # Pure-JAX f32 reference (eval-mode forward: both dropouts are identity).
    ref = jnp.tanh(x @ w1.T + b1) @ w2.T + b2
    assert out.shape == (batch, output_size)
    # bf16 MXU operands => compare against the f32 reference with a loose tol.
    assert jnp.allclose(out, ref, atol=3e-2, rtol=3e-2), (
        float(jnp.max(jnp.abs(out - ref))))

    # Ragged batch (not a multiple of the tile / 8): exercises the multi-step
    # grid, megacore split, and Pallas' partial-last-block handling.
    x_big = jax.random.normal(kx, (37, hidden_size), jnp.float32)
    out_big = jax.block_until_ready(
        embedding_net_forward(x_big, w1, b1, w2, b2, block_b=16))
    ref_big = jnp.tanh(x_big @ w1.T + b1) @ w2.T + b2
    assert out_big.shape == (37, output_size)
    assert jnp.allclose(out_big, ref_big, atol=3e-2, rtol=3e-2), (
        float(jnp.max(jnp.abs(out_big - ref_big))))

    print("KERNEL_OK")
</pallas_src>

<mosaic_0001>
module attributes {stable_mosaic.version = 11 : i64} {
  func.func @_embedding_net_kernel(%arg0: i32, %arg1: memref<8x32xf32, #tpu.memory_space<vmem>>, %arg2: memref<32x256xbf16, #tpu.memory_space<vmem>>, %arg3: memref<1x256xf32, #tpu.memory_space<vmem>>, %arg4: memref<256x16xbf16, #tpu.memory_space<vmem>>, %arg5: memref<1x16xf32, #tpu.memory_space<vmem>>, %arg6: memref<8x16xf32, #tpu.memory_space<vmem>>) attributes {dimension_semantics = [#tpu.dimension_semantics<parallel>], iteration_bounds = array<i64: 1>, scalar_prefetch = 0 : i64, scratch_operands = 0 : i64, tpu.core_type = #tpu.core_type<tc>, window_params = [{transform_indices = @transform_0, window_bounds = array<i64: 8, 32>}, {pipeline_mode = #tpu.pipeline_mode<synchronous>, transform_indices = @transform_1, window_bounds = array<i64: 32, 256>}, {pipeline_mode = #tpu.pipeline_mode<synchronous>, transform_indices = @transform_2, window_bounds = array<i64: 1, 256>}, {pipeline_mode = #tpu.pipeline_mode<synchronous>, transform_indices = @transform_3, window_bounds = array<i64: 256, 16>}, {pipeline_mode = #tpu.pipeline_mode<synchronous>, transform_indices = @transform_4, window_bounds = array<i64: 1, 16>}, {transform_indices = @transform_5, window_bounds = array<i64: 8, 16>}]} {
    %c0 = arith.constant 0 : index
    %c0_0 = arith.constant 0 : index
    %0 = vector.load %arg1[%c0, %c0_0] : memref<8x32xf32, #tpu.memory_space<vmem>>, vector<8x32xf32>
    %1 = arith.truncf %0 : vector<8x32xf32> to vector<8x32xbf16>
    %c0_1 = arith.constant 0 : index
    %c0_2 = arith.constant 0 : index
    %2 = vector.load %arg2[%c0_1, %c0_2] : memref<32x256xbf16, #tpu.memory_space<vmem>>, vector<32x256xbf16>
    %cst = arith.constant dense<0.000000e+00> : vector<8x256xf32>
    %3 = tpu.matmul %1, %2, %cst {dimension_numbers = #tpu.dot_dimension_numbers<[1], [0], [0], [1], [0, 0, 1, 1], [], []>} : vector<8x32xbf16>, vector<32x256xbf16>, vector<8x256xf32> -> vector<8x256xf32>
    %c0_3 = arith.constant 0 : index
    %c0_4 = arith.constant 0 : index
    %4 = vector.load %arg3[%c0_3, %c0_4] : memref<1x256xf32, #tpu.memory_space<vmem>>, vector<1x256xf32>
    %5 = vector.broadcast %4 : vector<1x256xf32> to vector<8x256xf32>
    %6 = arith.addf %3, %5 : vector<8x256xf32>
    %7 = math.tanh %6 : vector<8x256xf32>
    %8 = arith.truncf %7 : vector<8x256xf32> to vector<8x256xbf16>
    %c0_5 = arith.constant 0 : index
    %c0_6 = arith.constant 0 : index
    %9 = vector.load %arg4[%c0_5, %c0_6] : memref<256x16xbf16, #tpu.memory_space<vmem>>, vector<256x16xbf16>
    %cst_7 = arith.constant dense<0.000000e+00> : vector<8x16xf32>
    %10 = tpu.matmul %8, %9, %cst_7 {dimension_numbers = #tpu.dot_dimension_numbers<[1], [0], [0], [1], [0, 0, 1, 1], [], []>} : vector<8x256xbf16>, vector<256x16xbf16>, vector<8x16xf32> -> vector<8x16xf32>
    %c0_8 = arith.constant 0 : index
    %c0_9 = arith.constant 0 : index
    %11 = vector.load %arg5[%c0_8, %c0_9] : memref<1x16xf32, #tpu.memory_space<vmem>>, vector<1x16xf32>
    %12 = vector.broadcast %11 : vector<1x16xf32> to vector<8x16xf32>
    %13 = arith.addf %10, %12 : vector<8x16xf32>
    %c0_10 = arith.constant 0 : index
    %c0_11 = arith.constant 0 : index
    %14 = vector.load %arg6[%c0_10, %c0_11] : memref<8x16xf32, #tpu.memory_space<vmem>>, vector<8x16xf32>
    tpu.vector_store %arg6[%c0_10, %c0_11], %13 {strides = array<i32>} : memref<8x16xf32, #tpu.memory_space<vmem>>, vector<8x16xf32>,
    return
  }
  func.func @transform_0(%arg0: i32) -> (i32, i32) {
    %c0_i32 = arith.constant 0 : i32
    %c0_i32_0 = arith.constant 0 : i32
    return %arg0, %c0_i32 : i32, i32
  }
  func.func @transform_1(%arg0: i32) -> (i32, i32) {
    %c0_i32 = arith.constant 0 : i32
    %c0_i32_0 = arith.constant 0 : i32
    %c0_i32_1 = arith.constant 0 : i32
    return %c0_i32, %c0_i32_0 : i32, i32
  }
  func.func @transform_2(%arg0: i32) -> (i32, i32) {
    %c0_i32 = arith.constant 0 : i32
    %c0_i32_0 = arith.constant 0 : i32
    %c0_i32_1 = arith.constant 0 : i32
    return %c0_i32, %c0_i32_0 : i32, i32
  }
  func.func @transform_3(%arg0: i32) -> (i32, i32) {
    %c0_i32 = arith.constant 0 : i32
    %c0_i32_0 = arith.constant 0 : i32
    %c0_i32_1 = arith.constant 0 : i32
    return %c0_i32, %c0_i32_0 : i32, i32
  }
  func.func @transform_4(%arg0: i32) -> (i32, i32) {
    %c0_i32 = arith.constant 0 : i32
    %c0_i32_0 = arith.constant 0 : i32
    %c0_i32_1 = arith.constant 0 : i32
    return %c0_i32, %c0_i32_0 : i32, i32
  }
  func.func @transform_5(%arg0: i32) -> (i32, i32) {
    %c0_i32 = arith.constant 0 : i32
    %c0_i32_0 = arith.constant 0 : i32
    return %arg0, %c0_i32 : i32, i32
  }
}

module attributes {stable_mosaic.version = 11 : i64} {
  func.func @_embedding_net_kernel(%arg0: i32, %arg1: memref<8x32xf32, #tpu.memory_space<vmem>>, %arg2: memref<32x256xbf16, #tpu.memory_space<vmem>>, %arg3: memref<1x256xf32, #tpu.memory_space<vmem>>, %arg4: memref<256x16xbf16, #tpu.memory_space<vmem>>, %arg5: memref<1x16xf32, #tpu.memory_space<vmem>>, %arg6: memref<8x16xf32, #tpu.memory_space<vmem>>) attributes {dimension_semantics = [#tpu.dimension_semantics<parallel>], iteration_bounds = array<i64: 1>, scalar_prefetch = 0 : i64, scratch_operands = 0 : i64, tpu.core_type = #tpu.core_type<tc>, window_params = [{transform_indices = @transform_0, window_bounds = array<i64: 8, 32>}, {pipeline_mode = #tpu.pipeline_mode<synchronous>, transform_indices = @transform_1, window_bounds = array<i64: 32, 256>}, {pipeline_mode = #tpu.pipeline_mode<synchronous>, transform_indices = @transform_2, window_bounds = array<i64: 1, 256>}, {pipeline_mode = #tpu.pipeline_mode<synchronous>, transform_indices = @transform_3, window_bounds = array<i64: 256, 16>}, {pipeline_mode = #tpu.pipeline_mode<synchronous>, transform_indices = @transform_4, window_bounds = array<i64: 1, 16>}, {transform_indices = @transform_5, window_bounds = array<i64: 8, 16>}]} {
    %c0 = arith.constant 0 : index
    %c0_0 = arith.constant 0 : index
    %0 = vector.load %arg1[%c0, %c0_0] : memref<8x32xf32, #tpu.memory_space<vmem>>, vector<8x32xf32>
    %1 = arith.truncf %0 : vector<8x32xf32> to vector<8x32xbf16>
    %c0_1 = arith.constant 0 : index
    %c0_2 = arith.constant 0 : index
    %2 = vector.load %arg2[%c0_1, %c0_2] : memref<32x256xbf16, #tpu.memory_space<vmem>>, vector<32x256xbf16>
    %cst = arith.constant dense<0.000000e+00> : vector<8x256xf32>
    %3 = tpu.matmul %1, %2, %cst {dimension_numbers = #tpu.dot_dimension_numbers<[1], [0], [0], [1], [0, 0, 1, 1], [], []>} : vector<8x32xbf16>, vector<32x256xbf16>, vector<8x256xf32> -> vector<8x256xf32>
    %c0_3 = arith.constant 0 : index
    %c0_4 = arith.constant 0 : index
    %4 = vector.load %arg3[%c0_3, %c0_4] : memref<1x256xf32, #tpu.memory_space<vmem>>, vector<1x256xf32>
    %5 = vector.broadcast %4 : vector<1x256xf32> to vector<8x256xf32>
    %6 = arith.addf %3, %5 : vector<8x256xf32>
    %7 = math.tanh %6 : vector<8x256xf32>
    %8 = arith.truncf %7 : vector<8x256xf32> to vector<8x256xbf16>
    %c0_5 = arith.constant 0 : index
    %c0_6 = arith.constant 0 : index
    %9 = vector.load %arg4[%c0_5, %c0_6] : memref<256x16xbf16, #tpu.memory_space<vmem>>, vector<256x16xbf16>
    %cst_7 = arith.constant dense<0.000000e+00> : vector<8x16xf32>
    %10 = tpu.matmul %8, %9, %cst_7 {dimension_numbers = #tpu.dot_dimension_numbers<[1], [0], [0], [1], [0, 0, 1, 1], [], []>} : vector<8x256xbf16>, vector<256x16xbf16>, vector<8x16xf32> -> vector<8x16xf32>
    %c0_8 = arith.constant 0 : index
    %c0_9 = arith.constant 0 : index
    %11 = vector.load %arg5[%c0_8, %c0_9] : memref<1x16xf32, #tpu.memory_space<vmem>>, vector<1x16xf32>
    %12 = vector.broadcast %11 : vector<1x16xf32> to vector<8x16xf32>
    %13 = arith.addf %10, %12 : vector<8x16xf32>
    %c0_10 = arith.constant 0 : index
    %c0_11 = arith.constant 0 : index
    %14 = vector.load %arg6[%c0_10, %c0_11] : memref<8x16xf32, #tpu.memory_space<vmem>>, vector<8x16xf32>
    tpu.vector_store %arg6[%c0_10, %c0_11], %13 {strides = array<i32>} : memref<8x16xf32, #tpu.memory_space<vmem>>, vector<8x16xf32>,
    return
  }
  func.func @transform_0(%arg0: i32) -> (i32, i32) {
    %c0_i32 = arith.constant 0 : i32
    %c0_i32_0 = arith.constant 0 : i32
    return %arg0, %c0_i32 : i32, i32
  }
  func.func @transform_1(%arg0: i32) -> (i32, i32) {
    %c0_i32 = arith.constant 0 : i32
    %c0_i32_0 = arith.constant 0 : i32
    %c0_i32_1 = arith.constant 0 : i32
    return %c0_i32, %c0_i32_0 : i32, i32
  }
  func.func @transform_2(%arg0: i32) -> (i32, i32) {
    %c0_i32 = arith.constant 0 : i32
    %c0_i32_0 = arith.constant 0 : i32
    %c0_i32_1 = arith.constant 0 : i32
    return %c0_i32, %c0_i32_0 : i32, i32
  }
  func.func @transform_3(%arg0: i32) -> (i32, i32) {
    %c0_i32 = arith.constant 0 : i32
    %c0_i32_0 = arith.constant 0 : i32
    %c0_i32_1 = arith.constant 0 : i32
    return %c0_i32, %c0_i32_0 : i32, i32
  }
  func.func @transform_4(%arg0: i32) -> (i32, i32) {
    %c0_i32 = arith.constant 0 : i32
    %c0_i32_0 = arith.constant 0 : i32
    %c0_i32_1 = arith.constant 0 : i32
    return %c0_i32, %c0_i32_0 : i32, i32
  }
  func.func @transform_5(%arg0: i32) -> (i32, i32) {
    %c0_i32 = arith.constant 0 : i32
    %c0_i32_0 = arith.constant 0 : i32
    return %arg0, %c0_i32 : i32, i32
  }
}

</mosaic_0001>

<bundles_post_ra>
// kernel: tpu_custom_call.1
= control target key start
LH: loop header
LB: loop body
LE: loop exit
PB: predicated region body
PF: predicated region fallthrough
CT: control target
= control target key end

     0   :  { %v396_v2 = vmov 0   ;;  %vm60_vm0 = vcmask 261120   ;;  %s509_s0 = inlined_call_operand.vmem [shape: f32[8,32], index: 0, kind: input, shape index: {}]   ;;  %s510_s1 = inlined_call_operand.vmem [shape: bf16[32,256], index: 1, kind: input, shape index: {}]   ;;  %s511_s2 = inlined_call_operand.vmem [shape: f32[1,256], index: 2, kind: input, shape index: {}]   ;;  %s512_s3 = inlined_call_operand.vmem [shape: bf16[256,16], index: 3, kind: input, shape index: {}]   ;;  %s513_s4 = inlined_call_operand.vmem [shape: f32[1,16], index: 4, kind: input, shape index: {}]   ;;  %s514_s5 = inlined_call_operand.hbm [shape: f32[8,16], index: 5, kind: output, shape index: {}]  }
   0x1   :  { %v346_v0 = vld [vmem:[%s510_s1 + $0x4] ss:$8 sps:$4 sm:$0xff]   ;;  %v348_v1 = vld [vmem:[%s510_s1] ss:$8 sps:$4 sm:$0xff]   ;;  %96 = vmatprep.mubr.bf16.mxu0 %v396_v2  ;;  %v349_v3 = vld [vmem:[%s510_s1 + $0x14] ss:$8 sps:$4 sm:$0xff]  }
   0x2   :  { %64 = vmatprep.subr.bf16.mxu0 %v346_v0  ;;  %v351_v4 = vld [vmem:[%s510_s1 + $0x10] ss:$8 sps:$4 sm:$0xff]   ;;  %v22_v5 = vld [vmem:[%s509_s0] sm:$0xff]  ;;  %v354_v8 = vld [vmem:[%s512_s3 + $0x48] sm:$0xff]  }
   0x3   :  { %65 = vmatpush1.bf16.msra.mxu0 %v348_v1  ;;  %v352_v6 = vld [vmem:[%s512_s3 + $0x40] sm:$0xff]   ;;  %v23_v9 = vpack.c.bf16 %v22_v5, %v22_v5  ;;  %v355_v10 = vld [vmem:[%s512_s3 + $0x8] sm:$0xff]   ;;  %v356_v11 = vld [vmem:[%s512_s3 + $0x50] sm:$0xff]  }
   0x4   :  { %66 = vmatprep.subr.bf16.mxu0 %v349_v3  ;;  %v353_v7 = vld [vmem:[%s512_s3] sm:$0xff]   ;;  %322 = vmatprep.subr.bf16.mxu1 %v352_v6  ;;  %v357_v12 = vld [vmem:[%s512_s3 + $0x10] sm:$0xff]   ;;  %v358_v13 = vld [vmem:[%s512_s3 + $0x58] sm:$0xff]  }
   0x5   :  { %323 = vmatpush3.bf16.msra.mxu1 %v353_v7  ;;  %v359_v14 = vld [vmem:[%s512_s3 + $0x18] sm:$0xff]  }
   0x6   :  { %324 = vmatprep.subr.bf16.mxu1 %v354_v8 }
   0x7   :  { %67 = vmatpush1.bf16.msra.mxu0 %v351_v4 }
   0x9   :  { %325 = vmatpush3.bf16.msra.mxu1 %v355_v10 }
   0xa   :  { %304 = vmatmul.mubr.msk.bf16.vlgmr.msra.gmra.mrb[0].mxu0 %vm60_vm0, %v23_v9  ;;  %326 = vmatprep.subr.bf16.mxu1 %v356_v11 }
   0xd   :  { %327 = vmatpush3.bf16.msra.mxu1 %v357_v12 }
   0xe   :  { %328 = vmatprep.subr.bf16.mxu1 %v358_v13 }
   0xf   :  { %10 = vsyncpa [#allocation3], 0  ;;  %v360_v15 = vld [vmem:[%s512_s3 + $0x60] sm:$0xff]   ;;  %v362_v17 = vld [vmem:[%s512_s3 + $0x68] sm:$0xff]   ;;  %v30_v23 = vlaneseq  ;;  %s397_s9 = smov [#allocation2]   ;;  %vm284_vm1 = vcmask 130048  }
  0x10   :  { %v361_v16 = vld [vmem:[%s512_s3 + $0x20] sm:$0xff]   ;;  %v363_v18 = vld [vmem:[%s512_s3 + $0x28] sm:$0xff]   ;;  %v364_v19 = vld [vmem:[%s512_s3 + $0x70] sm:$0xff]   ;;  %s292_s0 = sshll.u32 %s397_s9, 4  ;;  %s293_s0 = int_to_ptr.vmem [resolvable:$true] %s292_s0 }
  0x11   :  { %329 = vmatpush3.bf16.msra.mxu1 %v359_v14  ;;  %v365_v20 = vld [vmem:[%s512_s3 + $0x30] sm:$0xff]   ;;  %v366_v21 = vld [vmem:[%s512_s3 + $0x78] sm:$0xff]   ;;  %v31_v24 = vshrl.u32 %v30_v23, 7  ;;  %v28_v26 = vld [vmem:[%s511_s2] sm:$0x3]  ;;  %s372_s10 = scalar_lea.vmem %s293_s0, 128  ;;  %p377_p1 = scmp.lt.s32.totalorder %s293_s0, %s293_s0 }
  0x12   :  { %330 = vmatprep.subr.bf16.mxu1 %v360_v15  ;;  %v367_v22 = vld [vmem:[%s512_s3 + $0x38] sm:$0xff]   ;;  %v305_v41 = vld [vmem:[%s513_s4] ss:$0 sm:$0xff]  ;;  %p373_p0 = scmp.ne.s32.totalorder %s293_s0, %s372_s10  ;;  %p378_p2 = scmp.lt.s32.totalorder %s372_s10, %s372_s10 }
  0x13   :  { %v32_v25 = vsub.s32 0, %v31_v24  ;;  %v36_v27 = vsub.s32 1, %v31_v24 }
  0x14   :  { %p379_p3 = por %p378_p2, %p377_p1 }
  0x15   :  { %331 = vmatpush3.bf16.msra.mxu1 %v361_v16  ;;  %v33_v28 = vrot.slane %v28_v26, %v32_v25  ;;  %v37_v29 = vrot.slane %v28_v26, %v36_v27 }
  0x16   :  { %332 = vmatprep.subr.bf16.mxu1 %v362_v17  ;;  %p380_p4 = pnand %p379_p3, %p373_p0 }
  0x19   :  { %333 = vmatpush3.bf16.msra.mxu1 %v363_v18 }
  0x1a   :  { %334 = vmatprep.subr.bf16.mxu1 %v364_v19 }
  0x1d   :  { %335 = vmatpush3.bf16.msra.mxu1 %v365_v20 }
  0x1e   :  { %336 = vmatprep.subr.bf16.mxu1 %v366_v21 }
  0x21   :  { %337 = vmatpush3.bf16.msra.mxu1 %v367_v22 }
  0xdd   :  { %v98_v30 = vpop.f32.mrb[0].mxu0 }
  0xde   :  { %v99_v31 = vadd.f32 %v98_v30, %v33_v28  ;;  %v100_v32 = vpop.f32.mrb[1].mxu0 }
  0xdf   :  { %v101_v33 = vadd.f32 %v100_v32, %v37_v29  ;;  %v102_v34 = vpop.f32.mrb[2].mxu0 }
  0xe0   :  { %368 = vtanh.f32 %v99_v31  ;;  %v103_v35 = vpop.f32.mrb[3].mxu0 }
  0xe1   :  { %370 = vtanh.f32 %v101_v33 }
  0xea   :  { %v369_v36 = vpop.eup %368 }
  0xeb   :  { %v371_v37 = vpop.eup %370  ;;  %v107_v39 = vpack.c.bf16 %v369_v36, %v369_v36 }
  0xec   :  { %v108_v38 = vpack.c.bf16 %v371_v37, %v371_v37 }
  0xee   :  { %276 = vmatprep.mubr.bf16.mxu1 %v108_v38 }
  0xef   :  { %277 = vmatmul.mubr.bf16.vlgmr.msra.gmra.mrb[0].mxu1 %v107_v39 }
 0x1c2   :  { %v338_v40 = vpop.f32.mrb[0].mxu1 }
 0x1c3   :  { %v339_v42 = vpop.f32.mrb[1].mxu1 }
 0x1c4   :  { %v340_v43 = vadd.f32 %v339_v42, %v338_v40  ;;  %v341_v44 = vpop.f32.mrb[2].mxu1 }
 0x1c5   :  { %v342_v45 = vpop.f32.mrb[3].mxu1 }
 0x1c6   :  { %v279_v46 = vadd.f32 %v340_v43, %v305_v41 }
 0x1c8   :  { %285 = vst.msk [vmem:[#allocation2] sm:$0xff] %vm284_vm1, %v279_v46 }
 0x1c9   :  { %383 = shalt.err (!%p380_p4)
}
 0x1ca   :  { %s384_s4 = scalar_lea.hbm %s514_s5, 128 }
 0x1cb   :  { %p385_p5 = scmp.ne.s32.totalorder %s514_s5, %s384_s4  ;;  %p388_p6 = scmp.lt.u32.totalorder %s384_s4, %s514_s5 }
 0x1cd   :  { %p390_p7 = pnand %p388_p6, %p385_p5 }
 0x1cf   :  { %393 = shalt.err (!%p390_p7)
}
 0x1d0   :  { %295 = dma.vmem_to_hbm [thread:$0]  %s293_s0, 128, %s514_s5, [#allocation3]  }
 0x1d1   :  { %394 = dma.done.wait [#allocation3], 128  }
 0x1d2   :  { %395 = vsyncadd [#allocation3], 4294967168 }
 0x1d3   :  { %299 = vsyncpa [#allocation3], 1 }

// kernel: tpu_custom_call.1
= control target key start
LH: loop header
LB: loop body
LE: loop exit
PB: predicated region body
PF: predicated region fallthrough
CT: control target
= control target key end

     0   :  { %v396_v2 = vmov 0   ;;  %vm60_vm0 = vcmask 261120   ;;  %s509_s0 = inlined_call_operand.vmem [shape: f32[8,32], index: 0, kind: input, shape index: {}]   ;;  %s510_s1 = inlined_call_operand.vmem [shape: bf16[32,256], index: 1, kind: input, shape index: {}]   ;;  %s511_s2 = inlined_call_operand.vmem [shape: f32[1,256], index: 2, kind: input, shape index: {}]   ;;  %s512_s3 = inlined_call_operand.vmem [shape: bf16[256,16], index: 3, kind: input, shape index: {}]   ;;  %s513_s4 = inlined_call_operand.vmem [shape: f32[1,16], index: 4, kind: input, shape index: {}]   ;;  %s514_s5 = inlined_call_operand.hbm [shape: f32[8,16], index: 5, kind: output, shape index: {}]  }
   0x1   :  { %v346_v0 = vld [vmem:[%s510_s1 + $0x4] ss:$8 sps:$4 sm:$0xff]   ;;  %v348_v1 = vld [vmem:[%s510_s1] ss:$8 sps:$4 sm:$0xff]   ;;  %96 = vmatprep.mubr.bf16.mxu0 %v396_v2  ;;  %v349_v3 = vld [vmem:[%s510_s1 + $0x14] ss:$8 sps:$4 sm:$0xff]  }
   0x2   :  { %64 = vmatprep.subr.bf16.mxu0 %v346_v0  ;;  %v351_v4 = vld [vmem:[%s510_s1 + $0x10] ss:$8 sps:$4 sm:$0xff]   ;;  %v22_v5 = vld [vmem:[%s509_s0] sm:$0xff]  ;;  %v354_v8 = vld [vmem:[%s512_s3 + $0x48] sm:$0xff]  }
   0x3   :  { %65 = vmatpush1.bf16.msra.mxu0 %v348_v1  ;;  %v352_v6 = vld [vmem:[%s512_s3 + $0x40] sm:$0xff]   ;;  %v23_v9 = vpack.c.bf16 %v22_v5, %v22_v5  ;;  %v355_v10 = vld [vmem:[%s512_s3 + $0x8] sm:$0xff]   ;;  %v356_v11 = vld [vmem:[%s512_s3 + $0x50] sm:$0xff]  }
   0x4   :  { %66 = vmatprep.subr.bf16.mxu0 %v349_v3  ;;  %v353_v7 = vld [vmem:[%s512_s3] sm:$0xff]   ;;  %322 = vmatprep.subr.bf16.mxu1 %v352_v6  ;;  %v357_v12 = vld [vmem:[%s512_s3 + $0x10] sm:$0xff]   ;;  %v358_v13 = vld [vmem:[%s512_s3 + $0x58] sm:$0xff]  }
   0x5   :  { %323 = vmatpush3.bf16.msra.mxu1 %v353_v7  ;;  %v359_v14 = vld [vmem:[%s512_s3 + $0x18] sm:$0xff]  }
   0x6   :  { %324 = vmatprep.subr.bf16.mxu1 %v354_v8 }
   0x7   :  { %67 = vmatpush1.bf16.msra.mxu0 %v351_v4 }
   0x9   :  { %325 = vmatpush3.bf16.msra.mxu1 %v355_v10 }
   0xa   :  { %304 = vmatmul.mubr.msk.bf16.vlgmr.msra.gmra.mrb[0].mxu0 %vm60_vm0, %v23_v9  ;;  %326 = vmatprep.subr.bf16.mxu1 %v356_v11 }
   0xd   :  { %327 = vmatpush3.bf16.msra.mxu1 %v357_v12 }
   0xe   :  { %328 = vmatprep.subr.bf16.mxu1 %v358_v13 }
   0xf   :  { %10 = vsyncpa [#allocation3], 0  ;;  %v360_v15 = vld [vmem:[%s512_s3 + $0x60] sm:$0xff]   ;;  %v362_v17 = vld [vmem:[%s512_s3 + $0x68] sm:$0xff]   ;;  %v30_v23 = vlaneseq  ;;  %s397_s9 = smov [#allocation2]   ;;  %vm284_vm1 = vcmask 130048  }
  0x10   :  { %v361_v16 = vld [vmem:[%s512_s3 + $0x20] sm:$0xff]   ;;  %v363_v18 = vld [vmem:[%s512_s3 + $0x28] sm:$0xff]   ;;  %v364_v19 = vld [vmem:[%s512_s3 + $0x70] sm:$0xff]   ;;  %s292_s0 = sshll.u32 %s397_s9, 4  ;;  %s293_s0 = int_to_ptr.vmem [resolvable:$true] %s292_s0 }
  0x11   :  { %329 = vmatpush3.bf16.msra.mxu1 %v359_v14  ;;  %v365_v20 = vld [vmem:[%s512_s3 + $0x30] sm:$0xff]   ;;  %v366_v21 = vld [vmem:[%s512_s3 + $0x78] sm:$0xff]   ;;  %v31_v24 = vshrl.u32 %v30_v23, 7  ;;  %v28_v26 = vld [vmem:[%s511_s2] sm:$0x3]  ;;  %s372_s10 = scalar_lea.vmem %s293_s0, 128  ;;  %p377_p1 = scmp.lt.s32.totalorder %s293_s0, %s293_s0 }
  0x12   :  { %330 = vmatprep.subr.bf16.mxu1 %v360_v15  ;;  %v367_v22 = vld [vmem:[%s512_s3 + $0x38] sm:$0xff]   ;;  %v305_v41 = vld [vmem:[%s513_s4] ss:$0 sm:$0xff]  ;;  %p373_p0 = scmp.ne.s32.totalorder %s293_s0, %s372_s10  ;;  %p378_p2 = scmp.lt.s32.totalorder %s372_s10, %s372_s10 }
  0x13   :  { %v32_v25 = vsub.s32 0, %v31_v24  ;;  %v36_v27 = vsub.s32 1, %v31_v24 }
  0x14   :  { %p379_p3 = por %p378_p2, %p377_p1 }
  0x15   :  { %331 = vmatpush3.bf16.msra.mxu1 %v361_v16  ;;  %v33_v28 = vrot.slane %v28_v26, %v32_v25  ;;  %v37_v29 = vrot.slane %v28_v26, %v36_v27 }
  0x16   :  { %332 = vmatprep.subr.bf16.mxu1 %v362_v17  ;;  %p380_p4 = pnand %p379_p3, %p373_p0 }
  0x19   :  { %333 = vmatpush3.bf16.msra.mxu1 %v363_v18 }
  0x1a   :  { %334 = vmatprep.subr.bf16.mxu1 %v364_v19 }
  0x1d   :  { %335 = vmatpush3.bf16.msra.mxu1 %v365_v20 }
  0x1e   :  { %336 = vmatprep.subr.bf16.mxu1 %v366_v21 }
  0x21   :  { %337 = vmatpush3.bf16.msra.mxu1 %v367_v22 }
  0xdd   :  { %v98_v30 = vpop.f32.mrb[0].mxu0 }
  0xde   :  { %v99_v31 = vadd.f32 %v98_v30, %v33_v28  ;;  %v100_v32 = vpop.f32.mrb[1].mxu0 }
  0xdf   :  { %v101_v33 = vadd.f32 %v100_v32, %v37_v29  ;;  %v102_v34 = vpop.f32.mrb[2].mxu0 }
  0xe0   :  { %368 = vtanh.f32 %v99_v31  ;;  %v103_v35 = vpop.f32.mrb[3].mxu0 }
  0xe1   :  { %370 = vtanh.f32 %v101_v33 }
  0xea   :  { %v369_v36 = vpop.eup %368 }
  0xeb   :  { %v371_v37 = vpop.eup %370  ;;  %v107_v39 = vpack.c.bf16 %v369_v36, %v369_v36 }
  0xec   :  { %v108_v38 = vpack.c.bf16 %v371_v37, %v371_v37 }
  0xee   :  { %276 = vmatprep.mubr.bf16.mxu1 %v108_v38 }
  0xef   :  { %277 = vmatmul.mubr.bf16.vlgmr.msra.gmra.mrb[0].mxu1 %v107_v39 }
 0x1c2   :  { %v338_v40 = vpop.f32.mrb[0].mxu1 }
 0x1c3   :  { %v339_v42 = vpop.f32.mrb[1].mxu1 }
 0x1c4   :  { %v340_v43 = vadd.f32 %v339_v42, %v338_v40  ;;  %v341_v44 = vpop.f32.mrb[2].mxu1 }
 0x1c5   :  { %v342_v45 = vpop.f32.mrb[3].mxu1 }
 0x1c6   :  { %v279_v46 = vadd.f32 %v340_v43, %v305_v41 }
 0x1c8   :  { %285 = vst.msk [vmem:[#allocation2] sm:$0xff] %vm284_vm1, %v279_v46 }
 0x1c9   :  { %383 = shalt.err (!%p380_p4)
}
 0x1ca   :  { %s384_s4 = scalar_lea.hbm %s514_s5, 128 }
 0x1cb   :  { %p385_p5 = scmp.ne.s32.totalorder %s514_s5, %s384_s4  ;;  %p388_p6 = scmp.lt.u32.totalorder %s384_s4, %s514_s5 }
 0x1cd   :  { %p390_p7 = pnand %p388_p6, %p385_p5 }
 0x1cf   :  { %393 = shalt.err (!%p390_p7)
}
 0x1d0   :  { %295 = dma.vmem_to_hbm [thread:$0]  %s293_s0, 128, %s514_s5, [#allocation3]  }
 0x1d1   :  { %394 = dma.done.wait [#allocation3], 128  }
 0x1d2   :  { %395 = vsyncadd [#allocation3], 4294967168 }
 0x1d3   :  { %299 = vsyncpa [#allocation3], 1 }

</bundles_post_ra>
